<compile_context>
chip_gen: v7x
topology: tpu7x:2x2x1
jax: 0.10.0
libtpu: 0.0.40
codegen_flags: <defaults>
</compile_context>

<pallas_src>
import math

import jax
import jax.numpy as jnp
from jax.experimental import pallas as pl
from jax.experimental.pallas import tpu as pltpu


def _append_cls_kernel(x_ref, w_ref, o_ref):
    # x_ref: (bt, N*D)        flattened token rows for this batch block
    # w_ref: (1, D)           the [CLS] weight (same for every batch element)
    # o_ref: (bt, (N+1)*D)    flattened output rows
    bt, nd = x_ref.shape
    d = w_ref.shape[1]
    # Bulk copy of the original tokens: one unmasked lane-dense store.
    o_ref[:, :nd] = x_ref[...]
    # Append the CLS token: one broadcast store covering all bt rows at once.
    o_ref[:, nd:] = jnp.broadcast_to(w_ref[...], (bt, d))


def _vmem_budget_bytes(requested: int) -> int:
    """Clamp the block budget to half of physical VMEM (v7x has only 64 MiB)."""
    try:
        cap = int(pltpu.get_tpu_info().vmem_capacity_bytes)
    except Exception:
        cap = 64 * 1024 * 1024  # conservative: v7x physical VMEM
    return int(max(1 << 20, min(requested, cap // 2)))


def _choose_batch_block(B: int, max_bt: int) -> int:
    """Pick a batch block size.

    Preference order: sublane-aligned (multiple of 8), divides B evenly (no
    ragged tail), and leaves >= 2 grid steps for megacore when B is large
    enough -- otherwise fall back to the largest block that fits.
    """
    max_bt = max(1, min(B, max_bt))
    if max_bt >= B:
        # Whole batch fits in one block.  Split large batches in two (with
        # aligned, evenly dividing blocks) so v7x's second TensorCore helps.
        if B >= 16:
            c = ((B // 2) // 8) * 8
            while c >= 8:
                if B % c == 0:
                    return c
                c -= 8
        return B
    if max_bt >= 8:
        best = (max_bt // 8) * 8
        c = best
        while c >= 8:
            if B % c == 0:
                return c
            c -= 8
        return best  # ragged tail, but main blocks stay sublane-aligned
    return max_bt  # rare: one batch element is nearly the whole budget


def append_cls_token(
    x: jax.Array,
    weight: jax.Array,
    *,
    vmem_budget_bytes: int = 32 * 1024 * 1024,
) -> jax.Array:
    """Equivalent of AppendCLSToken.forward: cat([x, weight broadcast], dim=1)."""
    assert x.ndim == 3
    B, N, D = x.shape
    assert weight.shape == (D,)
    w2d = weight.reshape(1, D).astype(x.dtype)

    dsize = jnp.dtype(x.dtype).itemsize
    budget = _vmem_budget_bytes(vmem_budget_bytes)

    # Double-buffered input + output footprint per batch element.
    per_elem_bytes = 2 * (N * D + (N + 1) * D) * dsize
    if per_elem_bytes > budget:
        # TODO(synk): sub-tile the flattened row (second grid axis over chunks,
        # CLS written only on the last chunk via pl.when) for huge N*D instead
        # of this plain-XLA fallback.
        return jnp.concatenate(
            [x, jnp.broadcast_to(w2d[None], (B, 1, D))], axis=1
        )

    bt = _choose_batch_block(B, budget // per_elem_bytes)
    grid_b = pl.cdiv(B, bt)

    needed_bytes = bt * per_elem_bytes + 2 * D * dsize  # blocks + weight
    # Always set the scoped-VMEM limit (v5e defaults to only 16 MiB), with
    # headroom for internal scratch, clamped under v7x's 64 MiB physical VMEM.
    vmem_limit = int(min(56 * 1024 * 1024,
                         max(16 * 1024 * 1024, needed_bytes + (8 << 20))))

    bytes_accessed = (B * N * D + B * (N + 1) * D + D) * dsize
    cost = pl.CostEstimate(flops=0, transcendentals=0,
                           bytes_accessed=bytes_accessed)

    # Lane-dense flattened views (free reshapes of contiguous HBM).
    x2 = x.reshape(B, N * D)

    out2 = pl.pallas_call(
        _append_cls_kernel,
        out_shape=jax.ShapeDtypeStruct((B, (N + 1) * D), x.dtype),
        grid_spec=pltpu.PrefetchScalarGridSpec(
            num_scalar_prefetch=0,
            grid=(grid_b,),
            in_specs=[
                pl.BlockSpec((bt, N * D), lambda b: (b, 0)),
                pl.BlockSpec((1, D), lambda b: (0, 0)),  # constant block
            ],
            out_specs=pl.BlockSpec((bt, (N + 1) * D), lambda b: (b, 0)),
        ),
        compiler_params=pltpu.CompilerParams(
            dimension_semantics=("parallel",),
            vmem_limit_bytes=vmem_limit,
        ),
        cost_estimate=cost,
    )(x2, w2d)
    return out2.reshape(B, N + 1, D)


def init_cls_weight(key, d_token: int, initialization: str = "kaiming_uniform"):
    """Stand-in for _initialize_kaiming on a (d_token,) parameter."""
    d_sqrt_inv = 1.0 / math.sqrt(d_token)
    if initialization == "kaiming_uniform":
        return jax.random.uniform(
            key, (d_token,), dtype=jnp.float32, minval=-d_sqrt_inv, maxval=d_sqrt_inv
        )
    elif initialization == "kaiming_normal":
        return jax.random.normal(key, (d_token,), dtype=jnp.float32) * d_sqrt_inv
    elif initialization is None:
        return jnp.zeros((d_token,), dtype=jnp.float32)
    else:
        raise NotImplementedError(
            "initialization should be either of `kaiming_normal`, "
            "`kaiming_uniform`, `None`"
        )


if __name__ == "__main__":
    key = jax.random.PRNGKey(0)
    kx, kw = jax.random.split(key)

    B, N, D = 2, 8, 32  # small shapes consistent with the module's forward
    x = jax.random.normal(kx, (B, N, D), dtype=jnp.float32)
    weight = init_cls_weight(kw, D, "kaiming_uniform")

    out = append_cls_token(x, weight)
    out = jax.block_until_ready(out)

    # Reference: torch.cat([x, w.view(1,1,-1).repeat(B,1,1)], dim=1)
    ref = jnp.concatenate(
        [x, jnp.broadcast_to(weight[None, None, :], (B, 1, D))], axis=1
    )
    assert out.shape == (B, N + 1, D)
    assert jnp.allclose(out, ref), "mismatch vs reference"

    print("KERNEL_OK")
</pallas_src>

<mosaic_0001>
module attributes {stable_mosaic.version = 11 : i64} {
  func.func @_append_cls_kernel(%arg0: i32, %arg1: memref<2x256xf32, #tpu.memory_space<vmem>>, %arg2: memref<1x32xf32, #tpu.memory_space<vmem>>, %arg3: memref<2x288xf32, #tpu.memory_space<vmem>>) attributes {dimension_semantics = [#tpu.dimension_semantics<parallel>], iteration_bounds = array<i64: 1>, scalar_prefetch = 0 : i64, scratch_operands = 0 : i64, tpu.core_type = #tpu.core_type<tc>, window_params = [{transform_indices = @transform_0, window_bounds = array<i64: 2, 256>}, {pipeline_mode = #tpu.pipeline_mode<synchronous>, transform_indices = @transform_1, window_bounds = array<i64: 1, 32>}, {transform_indices = @transform_2, window_bounds = array<i64: 2, 288>}]} {
    %c0 = arith.constant 0 : index
    %c0_0 = arith.constant 0 : index
    %0 = vector.load %arg1[%c0, %c0_0] : memref<2x256xf32, #tpu.memory_space<vmem>>, vector<2x256xf32>
    %c0_1 = arith.constant 0 : index
    %c0_2 = arith.constant 0 : index
    %1 = vector.load %arg3[%c0_1, %c0_2] : memref<2x288xf32, #tpu.memory_space<vmem>>, vector<2x256xf32>
    tpu.vector_store %arg3[%c0_1, %c0_2], %0 {strides = array<i32>} : memref<2x288xf32, #tpu.memory_space<vmem>>, vector<2x256xf32>,
    %c0_3 = arith.constant 0 : index
    %c0_4 = arith.constant 0 : index
    %2 = vector.load %arg2[%c0_3, %c0_4] : memref<1x32xf32, #tpu.memory_space<vmem>>, vector<1x32xf32>
    %3 = vector.shape_cast %2 : vector<1x32xf32> to vector<1x32xf32>
    %4 = vector.broadcast %3 : vector<1x32xf32> to vector<2x32xf32>
    %c0_5 = arith.constant 0 : index
    %c256 = arith.constant 256 : index
    %5 = vector.load %arg3[%c0_5, %c256] : memref<2x288xf32, #tpu.memory_space<vmem>>, vector<2x32xf32>
    tpu.vector_store %arg3[%c0_5, %c256], %4 {strides = array<i32>} : memref<2x288xf32, #tpu.memory_space<vmem>>, vector<2x32xf32>,
    return
  }
  func.func @transform_0(%arg0: i32) -> (i32, i32) {
    %c0_i32 = arith.constant 0 : i32
    %c0_i32_0 = arith.constant 0 : i32
    return %arg0, %c0_i32 : i32, i32
  }
  func.func @transform_1(%arg0: i32) -> (i32, i32) {
    %c0_i32 = arith.constant 0 : i32
    %c0_i32_0 = arith.constant 0 : i32
    %c0_i32_1 = arith.constant 0 : i32
    return %c0_i32, %c0_i32_0 : i32, i32
  }
  func.func @transform_2(%arg0: i32) -> (i32, i32) {
    %c0_i32 = arith.constant 0 : i32
    %c0_i32_0 = arith.constant 0 : i32
    return %arg0, %c0_i32 : i32, i32
  }
}

</mosaic_0001>

<bundles_post_ra>
// kernel: tpu_custom_call.1
= control target key start
LH: loop header
LB: loop body
LE: loop exit
PB: predicated region body
PF: predicated region fallthrough
CT: control target
= control target key end

     0   :  { %7 = vsyncpa [#allocation3], 0  ;;  %s145_s0 = inlined_call_operand.hbm [shape: f32[2,256], index: 0, kind: input, shape index: {}]   ;;  %s146_s1 = inlined_call_operand.vmem [shape: f32[1,32], index: 1, kind: input, shape index: {}]   ;;  %s147_s2 = inlined_call_operand.hbm [shape: f32[2,288], index: 2, kind: output, shape index: {}]  }
   0x1   :  { %8 = vsyncpa [#allocation4], 0  ;;  %s101_s9 = smov [#allocation2]   ;;  %s53_s13 = scalar_lea.hbm %s145_s0, 64 }
   0x2   :  { %s15_s10 = sshll.u32 %s101_s9, 4  ;;  %p54_p0 = scmp.ne.s32.totalorder %s145_s0, %s53_s13  ;;  %s16_s10 = int_to_ptr.vmem [resolvable:$true] %s15_s10 }
   0x3   :  { %p57_p1 = scmp.lt.u32.totalorder %s53_s13, %s145_s0 }
   0x5   :  { %p59_p2 = pnand %p57_p1, %p54_p0 }
   0x7   :  { %62 = shalt.err (!%p59_p2)
}
   0x8   :  { %s63_s18 = scalar_lea.vmem %s16_s10, 64  ;;  %p68_p4 = scmp.lt.s32.totalorder %s16_s10, %s16_s10 }
   0x9   :  { %p64_p3 = scmp.ne.s32.totalorder %s16_s10, %s63_s18  ;;  %p69_p5 = scmp.lt.s32.totalorder %s63_s18, %s63_s18 }
   0xb   :  { %p70_p6 = por %p69_p5, %p68_p4 }
   0xd   :  { %p71_p7 = pnand %p70_p6, %p64_p3 }
   0xf   :  { %74 = shalt.err (!%p71_p7)
}
  0x10   :  { %18 = dma.hbm_to_vmem [thread:$0]  %s145_s0, 64, %s16_s10, [#allocation3]  }
  0x11   :  { %97 = dma.done.wait [#allocation3], 64  }
  0x12   :  { %98 = vsyncadd [#allocation3], 4294967232  ;;  %s102_s21 = smov [#allocation5]   ;;  %vm33_vm0 = vcmask 254976   ;;  %v24_v0 = vld [vmem:[#allocation2] sm:$0xf] }
  0x13   :  { %s41_s22 = sshll.u32 %s102_s21, 4  ;;  %v50_v1 = vld [vmem:[%s146_s1] ss:$0 sm:$0xff]  ;;  %25 = vst [vmem:[#allocation5] sm:$0xf] %v24_v0  ;;  %s42_s22 = int_to_ptr.vmem [resolvable:$true] %s41_s22 }
  0x14   :  { %34 = vst.msk [vmem:[#allocation5 + $0x4] sm:$0x3] %vm33_vm0, %v50_v1  ;;  %s75_s25 = scalar_lea.vmem %s42_s22, 96  ;;  %p80_p9 = scmp.lt.s32.totalorder %s42_s22, %s42_s22 }
  0x15   :  { %p76_p8 = scmp.ne.s32.totalorder %s42_s22, %s75_s25  ;;  %p81_p10 = scmp.lt.s32.totalorder %s75_s25, %s75_s25 }
  0x17   :  { %p82_p11 = por %p81_p10, %p80_p9 }
  0x19   :  { %p83_p12 = pnand %p82_p11, %p76_p8 }
  0x1b   :  { %86 = shalt.err (!%p83_p12)
}
  0x1c   :  { %s87_s27 = scalar_lea.hbm %s147_s2, 96 }
  0x1d   :  { %p88_p13 = scmp.ne.s32.totalorder %s147_s2, %s87_s27  ;;  %p91_p0 = scmp.lt.u32.totalorder %s87_s27, %s147_s2 }
  0x1f   :  { %p93_p1 = pnand %p91_p0, %p88_p13 }
  0x21   :  { %96 = shalt.err (!%p93_p1)
}
  0x22   :  { %44 = dma.vmem_to_hbm [thread:$0]  %s42_s22, 96, %s147_s2, [#allocation4]  }
  0x23   :  { %99 = dma.done.wait [#allocation4], 96  }
  0x24   :  { %100 = vsyncadd [#allocation4], 4294967200 }
  0x25   :  { %48 = vsyncpa [#allocation3], 1 }
  0x26   :  { %49 = vsyncpa [#allocation4], 1 }

</bundles_post_ra>
